<compile_context>
chip_gen: v7x
topology: tpu7x:2x2x1
jax: 0.10.0
libtpu: 0.0.40
codegen_flags: <defaults>
</compile_context>

<pallas_src>
import functools

import jax
import jax.numpy as jnp
from jax.experimental import pallas as pl
from jax.experimental.pallas import tpu as pltpu


# ---------------------------------------------------------------------------
# Generation-aware tiling configuration
# ---------------------------------------------------------------------------

@functools.lru_cache(maxsize=None)
def _device_config():
    """Returns (scoped-vmem-limit bytes | None, input-block byte target, min grid)."""
    try:
        kind = jax.devices()[0].device_kind.lower()
    except Exception:
        kind = ""
    if "v7" in kind:
        # v7x: 64 MiB physical VMEM -> keep the scoped cap at 32 MiB.
        # Two TensorCores share the grid, so keep >= 2 grid steps when possible.
        return 32 * 1024 * 1024, 8 * 1024 * 1024, 2
    if any(t in kind for t in ("v4", "v5", "v6")):
        # 128 MiB physical VMEM, single TensorCore: big blocks, no grid-length
        # preference (per-step pipeline overhead is all that matters).
        return 64 * 1024 * 1024, 8 * 1024 * 1024, 1
    # Unknown part: stay under the default scoped-VMEM limit.
    return None, 3 * 1024 * 1024, 1


def _compiler_params():
    vmem_limit, _, _ = _device_config()
    kwargs = dict(dimension_semantics=("parallel",))
    if vmem_limit is not None:
        kwargs["vmem_limit_bytes"] = vmem_limit
    return pltpu.CompilerParams(**kwargs)


def _pick_rows_per_block(rows, in_row_bytes, itemsize, target_bytes, min_grid):
    """Output rows per grid step.

    Returns either the full row count (always a legal sublane extent) or a
    multiple of the packed-sublane quantum (8 for f32, 16 for bf16), so the
    (8,128) BlockSpec constraint is always satisfied; non-divisible row counts
    are handled by Pallas' masked ragged-tail writeback.
    """
    q = 8 * max(1, 4 // max(itemsize, 1))           # 8 f32 / 16 bf16 / 32 int8
    cap = max(q, (target_bytes // max(in_row_bytes, 1)) // q * q)
    if min_grid > 1 and rows > q:
        per_core = -(-rows // min_grid)             # ceil(rows / min_grid)
        cap = min(cap, max(q, -(-per_core // q) * q))
    return rows if cap >= rows else cap


# ---------------------------------------------------------------------------
# Kernels
# ---------------------------------------------------------------------------

def _pool_h_kernel(x_ref, o_ref):
    """avg_pool2d kernel (2,1): each input row is [H-row 2i | H-row 2i+1].

    x_ref: (OB, 2*L)   o_ref: (OB, L)
    Pure lane-half add: vld + vadd + vst per (8,128) tile, no cross-sublane
    relayout, input and output stay lane-dense.
    """
    w = o_ref.shape[-1]
    a = x_ref[:, :w].astype(jnp.float32)
    b = x_ref[:, w:].astype(jnp.float32)
    o_ref[...] = ((a + b) * 0.5).astype(o_ref.dtype)


def _pool_hw_kernel(x_ref, o_ref):
    """avg_pool2d kernel (2,2) on channels-last blocks.

    x_ref: (2*OB, W//2, 2*C)   o_ref: (OB, W//2, C)
    H-pair sum is a leading-axis pair add (vreg select only); W-pair sum is an
    add of two contiguous lane halves.
    """
    c = o_ref.shape[-1]
    x = x_ref[...].astype(jnp.float32)
    s = x[0::2] + x[1::2]           # H-pair sum
    s = s[..., :c] + s[..., c:]     # W-pair sum
    o_ref[...] = (s * 0.25).astype(o_ref.dtype)


# ---------------------------------------------------------------------------
# Pooling wrappers
# ---------------------------------------------------------------------------

def _avg_pool_row_pairs(xr, block_rows=None):
    """xr: (rows, 2*L) where each row holds two adjacent H rows -> (rows, L)."""
    rows, lanes_in = xr.shape
    out_w = lanes_in // 2
    itemsize = jnp.dtype(xr.dtype).itemsize
    _, target, min_grid = _device_config()
    if block_rows is not None:
        ob = max(1, min(int(block_rows), rows))
    else:
        ob = _pick_rows_per_block(rows, lanes_in * itemsize, itemsize,
                                  target, min_grid)
    grid = pl.cdiv(rows, ob)
    return pl.pallas_call(
        _pool_h_kernel,
        out_shape=jax.ShapeDtypeStruct((rows, out_w), xr.dtype),
        grid_spec=pltpu.PrefetchScalarGridSpec(
            num_scalar_prefetch=0,
            grid=(grid,),
            in_specs=[pl.BlockSpec((ob, lanes_in), lambda i: (i, 0))],
            out_specs=pl.BlockSpec((ob, out_w), lambda i: (i, 0)),
        ),
        compiler_params=_compiler_params(),
    )(xr)


_HALF_TARGET_IN_BYTES = 2 * 1024 * 1024   # 'half' is never used by Generator.


def _avgpool_half_nhwc(xt):
    """xt: (N, H, W, C) -> (N, H//2, W//2, C), 2x2 average pool."""
    n, h, w, c = xt.shape
    ht, wt = (h // 2) * 2, (w // 2) * 2
    w2 = wt // 2
    rows_out = (n * ht) // 2
    if rows_out == 0 or w2 == 0 or c == 0:
        return jnp.zeros((n, ht // 2, w2, c), xt.dtype)
    xt = xt[:, :ht, :wt]
    xr = xt.reshape(n * ht, w2, 2 * c)
    itemsize = jnp.dtype(xt.dtype).itemsize
    in_row_bytes = 2 * wt * c * itemsize            # input bytes per output row
    ob = max(1, min(rows_out, _HALF_TARGET_IN_BYTES // max(in_row_bytes, 1)))
    grid = pl.cdiv(rows_out, ob)
    out = pl.pallas_call(
        _pool_hw_kernel,
        out_shape=jax.ShapeDtypeStruct((rows_out, w2, c), xt.dtype),
        grid_spec=pltpu.PrefetchScalarGridSpec(
            num_scalar_prefetch=0,
            grid=(grid,),
            in_specs=[pl.BlockSpec((2 * ob, w2, 2 * c), lambda i: (i, 0, 0))],
            out_specs=pl.BlockSpec((ob, w2, c), lambda i: (i, 0, 0)),
        ),
        compiler_params=_compiler_params(),
    )(xr)
    return out.reshape(n, ht // 2, w2, c)


# ---------------------------------------------------------------------------
# DownSample.forward equivalents
# ---------------------------------------------------------------------------

def downsample(x, layer_type, *, _block_rows=None):
    """DownSample.forward with PyTorch NCHW semantics.  x: (N, C, H, W)."""
    if layer_type == 'none':
        return x
    n, c, h, w = x.shape
    ht = (h // 2) * 2                      # PyTorch avg_pool2d floor behaviour
    if layer_type == 'timepreserve':
        if ht == 0 or w == 0 or n * c == 0:
            return jnp.zeros((n, c, ht // 2, w), x.dtype)
        # Free reshape: each row = [H-row 2i | H-row 2i+1] of one (n, c) plane.
        xr = x[:, :, :ht, :].reshape(n * c * (ht // 2), 2 * w)
        y = _avg_pool_row_pairs(xr, block_rows=_block_rows)
        return y.reshape(n, c, ht // 2, w)
    if layer_type == 'half':
        # TODO(synk): 'half' is never instantiated by Generator (all of its
        # DownSamples are 'timepreserve'); it keeps the robust channels-last
        # layout with wrapper transposes instead of a fused NCHW kernel.
        xt = jnp.transpose(x, (0, 2, 3, 1))        # NCHW -> NHWC
        yt = _avgpool_half_nhwc(xt)
        return jnp.transpose(yt, (0, 3, 1, 2))     # NHWC -> NCHW
    raise RuntimeError(
        'Got unexpected donwsampletype %s, expected is [none, timepreserve, half]'
        % layer_type)


def downsample_nhwc(x, layer_type):
    """DownSample.forward on a channels-last (N, H, W, C) activation.

    This is what a fully channels-last Generator port would call (no
    transposes anywhere; lanes carry W*C which is large and 128-aligned for
    realistic Generator shapes).
    """
    if layer_type == 'none':
        return x
    n, h, w, c = x.shape
    ht = (h // 2) * 2
    if layer_type == 'timepreserve':
        if ht == 0 or w * c == 0 or n == 0:
            return jnp.zeros((n, ht // 2, w, c), x.dtype)
        xr = x[:, :ht].reshape(n * (ht // 2), 2 * w * c)
        y = _avg_pool_row_pairs(xr)
        return y.reshape(n, ht // 2, w, c)
    if layer_type == 'half':
        return _avgpool_half_nhwc(x)
    raise RuntimeError(
        'Got unexpected donwsampletype %s, expected is [none, timepreserve, half]'
        % layer_type)


# ---------------------------------------------------------------------------
# Pure-JAX reference + self-check
# ---------------------------------------------------------------------------

def _ref_downsample(x, layer_type):
    if layer_type == 'none':
        return x
    n, c, h, w = x.shape
    xf = x.astype(jnp.float32)
    if layer_type == 'timepreserve':
        ht = (h // 2) * 2
        y = xf[:, :, :ht, :].reshape(n, c, ht // 2, 2, w).mean(axis=3)
    elif layer_type == 'half':
        ht, wt = (h // 2) * 2, (w // 2) * 2
        y = xf[:, :, :ht, :wt].reshape(n, c, ht // 2, 2, wt // 2, 2).mean(axis=(3, 5))
    else:
        raise RuntimeError(layer_type)
    return y.astype(x.dtype)


if __name__ == "__main__":
    key = jax.random.PRNGKey(0)
    cases = [
        ((2, 4, 16, 16), jnp.float32),     # small smoke test
        ((2, 32, 16, 20), jnp.float32),    # Generator-like channel count
        ((1, 64, 9, 57), jnp.float32),     # odd H/W -> floor like PyTorch
        ((2, 64, 16, 24), jnp.bfloat16),   # f32-accumulation path
    ]
    ok = True

    def close(a, b, tol):
        return (a.shape == b.shape and a.dtype == b.dtype and
                bool(jnp.allclose(a.astype(jnp.float32), b.astype(jnp.float32),
                                  atol=tol, rtol=tol)))

    for shape, dtype in cases:
        key, sub = jax.random.split(key)
        x = jax.random.normal(sub, shape, dtype=jnp.float32).astype(dtype)
        tol = 1e-5 if dtype == jnp.float32 else 2e-2
        for layer_type in ('none', 'timepreserve', 'half'):
            y = jax.block_until_ready(downsample(x, layer_type))
            ok &= close(y, _ref_downsample(x, layer_type), tol)

    # Ragged row-block tail: 15 output rows, 8 rows per block -> grid of 2
    # with a masked partial last block (the path large tensors / v7x hit).
    key, sub = jax.random.split(key)
    xragged = jax.random.normal(sub, (1, 3, 10, 57), dtype=jnp.float32)
    y = jax.block_until_ready(downsample(xragged, 'timepreserve', _block_rows=8))
    ok &= close(y, _ref_downsample(xragged, 'timepreserve'), 1e-5)

    # Channels-last entry point (transpose-free end-to-end Generator layout).
    key, sub = jax.random.split(key)
    x_nhwc = jax.random.normal(sub, (2, 16, 12, 32), dtype=jnp.float32)
    x_nchw = jnp.transpose(x_nhwc, (0, 3, 1, 2))
    for layer_type in ('timepreserve', 'half'):
        y = jax.block_until_ready(downsample_nhwc(x_nhwc, layer_type))
        y_ref = jnp.transpose(_ref_downsample(x_nchw, layer_type), (0, 2, 3, 1))
        ok &= close(y, y_ref, 1e-5)

    print("KERNEL_OK" if ok else "KERNEL_MISMATCH")
</pallas_src>

<mosaic_0001>
module attributes {stable_mosaic.version = 11 : i64} {
  func.func @_pool_h_kernel(%arg0: i32, %arg1: memref<64x32xf32, #tpu.memory_space<vmem>>, %arg2: memref<64x16xf32, #tpu.memory_space<vmem>>) attributes {dimension_semantics = [#tpu.dimension_semantics<parallel>], iteration_bounds = array<i64: 1>, scalar_prefetch = 0 : i64, scratch_operands = 0 : i64, tpu.core_type = #tpu.core_type<tc>, window_params = [{transform_indices = @transform_0, window_bounds = array<i64: 64, 32>}, {transform_indices = @transform_1, window_bounds = array<i64: 64, 16>}]} {
    %c0 = arith.constant 0 : index
    %c0_0 = arith.constant 0 : index
    %0 = vector.load %arg1[%c0, %c0_0] : memref<64x32xf32, #tpu.memory_space<vmem>>, vector<64x16xf32>
    %c0_1 = arith.constant 0 : index
    %c16 = arith.constant 16 : index
    %1 = vector.load %arg1[%c0_1, %c16] : memref<64x32xf32, #tpu.memory_space<vmem>>, vector<64x16xf32>
    %2 = arith.addf %0, %1 : vector<64x16xf32>
    %cst = arith.constant 5.000000e-01 : f32
    %3 = vector.broadcast %cst : f32 to vector<64x16xf32>
    %4 = arith.mulf %2, %3 : vector<64x16xf32>
    %c0_2 = arith.constant 0 : index
    %c0_3 = arith.constant 0 : index
    %5 = vector.load %arg2[%c0_2, %c0_3] : memref<64x16xf32, #tpu.memory_space<vmem>>, vector<64x16xf32>
    tpu.vector_store %arg2[%c0_2, %c0_3], %4 {strides = array<i32>} : memref<64x16xf32, #tpu.memory_space<vmem>>, vector<64x16xf32>,
    return
  }
  func.func @transform_0(%arg0: i32) -> (i32, i32) {
    %c0_i32 = arith.constant 0 : i32
    %c0_i32_0 = arith.constant 0 : i32
    return %arg0, %c0_i32 : i32, i32
  }
  func.func @transform_1(%arg0: i32) -> (i32, i32) {
    %c0_i32 = arith.constant 0 : i32
    %c0_i32_0 = arith.constant 0 : i32
    return %arg0, %c0_i32 : i32, i32
  }
}

</mosaic_0001>

<bundles_post_ra>
// kernel: tpu_custom_call.1
= control target key start
LH: loop header
LB: loop body
LE: loop exit
PB: predicated region body
PF: predicated region fallthrough
CT: control target
= control target key end

     0   :  { %s78_s10 = smov 112   ;;  %vm64_vm0 = vcmask 130048   ;;  %s145_s0 = inlined_call_operand.vmem [shape: f32[64,32], index: 0, kind: input, shape index: {}]   ;;  %s146_s1 = inlined_call_operand.vmem [shape: f32[64,16], index: 1, kind: output, shape index: {}]  }
   0x1   :  { %v10_v0 = vld [vmem:[%s145_s0 + $0x10] sm:$0xff]  ;;  %v8_v1 = vld [vmem:[%s145_s0] sm:$0xff]  ;;  %v11_v2 = vld [vmem:[%s145_s0 + $0x18] sm:$0xff] }
   0x2   :  { %28 = vrot.lane.b32.xlu1 %v10_v0, %s78_s10  ;;  %24 = vrot.lane.b32.xlu0 %v8_v1, %s78_s10  ;;  %v9_v3 = vld [vmem:[%s145_s0 + $0x8] sm:$0xff]  ;;  %v12_v5 = vld [vmem:[%s145_s0 + $0x20] sm:$0xff] }
   0x3   :  { %v13_v4 = vld [vmem:[%s145_s0 + $0x28] sm:$0xff]  ;;  %v15_v6 = vld [vmem:[%s145_s0 + $0x38] sm:$0xff]  ;;  %v14_v7 = vld [vmem:[%s145_s0 + $0x30] sm:$0xff] }
   0x6   :  { %30 = vrot.lane.b32.xlu1 %v11_v2, %s78_s10  ;;  %26 = vrot.lane.b32.xlu0 %v9_v3, %s78_s10 }
   0xa   :  { %34 = vrot.lane.b32.xlu1 %v13_v4, %s78_s10  ;;  %32 = vrot.lane.b32.xlu0 %v12_v5, %s78_s10 }
   0xe   :  { %38 = vrot.lane.b32.xlu1 %v15_v6, %s78_s10  ;;  %36 = vrot.lane.b32.xlu0 %v14_v7, %s78_s10 }
  0x74   :  { %v29_v8 = vpop.permute.xlu1 %28  ;;  %v25_v9 = vpop.permute.xlu0 %24 }
  0x75   :  { %v50_v10 = vadd.f32 %v29_v8, %v10_v0  ;;  %v48_v11 = vadd.f32 %v25_v9, %v8_v1 }
  0x77   :  { %v58_v12 = vmul.f32 0.5, %v50_v10  ;;  %v56_v13 = vmul.f32 0.5, %v48_v11 }
  0x78   :  { %v31_v14 = vpop.permute.xlu1 %30  ;;  %v27_v15 = vpop.permute.xlu0 %26 }
  0x79   :  { %67 = vst.msk [vmem:[%s146_s1 + $0x10] sm:$0xff] %vm64_vm0, %v58_v12  ;;  %65 = vst.msk [vmem:[%s146_s1] sm:$0xff] %vm64_vm0, %v56_v13  ;;  %v51_v16 = vadd.f32 %v31_v14, %v11_v2  ;;  %v49_v17 = vadd.f32 %v27_v15, %v9_v3 }
  0x7b   :  { %v59_v18 = vmul.f32 0.5, %v51_v16  ;;  %v57_v19 = vmul.f32 0.5, %v49_v17 }
  0x7c   :  { %v35_v20 = vpop.permute.xlu1 %34  ;;  %v33_v21 = vpop.permute.xlu0 %32 }
  0x7d   :  { %68 = vst.msk [vmem:[%s146_s1 + $0x18] sm:$0xff] %vm64_vm0, %v59_v18  ;;  %66 = vst.msk [vmem:[%s146_s1 + $0x8] sm:$0xff] %vm64_vm0, %v57_v19  ;;  %v53_v22 = vadd.f32 %v35_v20, %v13_v4  ;;  %v52_v23 = vadd.f32 %v33_v21, %v12_v5 }
  0x7f   :  { %v61_v24 = vmul.f32 0.5, %v53_v22  ;;  %v60_v25 = vmul.f32 0.5, %v52_v23 }
  0x80   :  { %v39_v26 = vpop.permute.xlu1 %38  ;;  %v37_v27 = vpop.permute.xlu0 %36 }
  0x81   :  { %70 = vst.msk [vmem:[%s146_s1 + $0x28] sm:$0xff] %vm64_vm0, %v61_v24  ;;  %69 = vst.msk [vmem:[%s146_s1 + $0x20] sm:$0xff] %vm64_vm0, %v60_v25  ;;  %v55_v28 = vadd.f32 %v39_v26, %v15_v6  ;;  %v54_v29 = vadd.f32 %v37_v27, %v14_v7 }
  0x83   :  { %v63_v30 = vmul.f32 0.5, %v55_v28  ;;  %v62_v31 = vmul.f32 0.5, %v54_v29 }
  0x85   :  { %72 = vst.msk [vmem:[%s146_s1 + $0x38] sm:$0xff] %vm64_vm0, %v63_v30  ;;  %71 = vst.msk [vmem:[%s146_s1 + $0x30] sm:$0xff] %vm64_vm0, %v62_v31 }

</bundles_post_ra>
